<compile_context>
chip_gen: v7x
topology: tpu7x:2x2x1
jax: 0.10.0
libtpu: 0.0.40
codegen_flags: <defaults>
</compile_context>

<pallas_src>
import jax
import jax.numpy as jnp
from jax.experimental import pallas as pl
from jax.experimental.pallas import tpu as pltpu


def _round_up(x: int, m: int) -> int:
    return (x + m - 1) // m * m


def _vmem_limit_bytes() -> int:
    """Generation-aware scoped-VMEM limit: physical - ~16 MiB, capped at 96 MiB."""
    mib = 1024 * 1024
    try:
        cap = int(pltpu.get_tpu_info().vmem_capacity_bytes)
    except Exception:
        return 48 * mib          # safe on every generation (incl. 64 MiB v7x)
    return int(max(32 * mib, min(cap - 16 * mib, 96 * mib)))


def _make_vq_kernel(kc: int, dist_in_bf16: bool):
    """Build the per-block kernel.

    Block shapes seen by the kernel:
      x_ref:   (nb, D, tm)  input pixels (channels on sublanes, pixels on lanes)
      e_ref:   (Kp, D)      codebook, padded to a multiple of 128 rows
      he2_ref: (Kp, 1)      0.5 * per-row squared norms (padded rows hold 1e30)
      q_ref:   (nb, D, tm)  quantized output (same channels-first layout)
      idx_ref: (nb, 1, tm)  argmin indices (int32), lane-dense
    """

    def kernel(x_ref, e_ref, he2_ref, q_ref, idx_ref):
        nb, _, tm = x_ref.shape
        kp = e_ref.shape[0]
        n_chunks = kp // kc

        # Hoisted: chunk-local row iota, reused for every image / chunk.
        iota = jax.lax.broadcasted_iota(jnp.int32, (kc, tm), 0)

        for b in range(nb):                       # static, nb is small (<= 8)
            x = x_ref[b].astype(jnp.float32)      # (D, tm)

            run_min = None
            run_idx = None
            q_acc = None
            for c in range(n_chunks):             # static unrolled K-chunk loop
                c0 = c * kc
                e_c = e_ref[pl.ds(c0, kc), :].astype(jnp.float32)   # (kc, D)
                he2_c = he2_ref[pl.ds(c0, kc), :]                   # (kc, 1)

                # Distances up to the per-pixel |x|^2 constant (argmin-
                # invariant) and with the factor 2 folded into he2:
                #   0.5*|e|^2 - e @ x        -> (kc, tm), pixels on lanes.
                if dist_in_bf16:
                    ex = jnp.dot(e_c.astype(jnp.bfloat16),
                                 x.astype(jnp.bfloat16),
                                 preferred_element_type=jnp.float32)
                else:
                    ex = jnp.dot(e_c, x, preferred_element_type=jnp.float32)
                dist = he2_c - ex                                    # (kc, tm)

                # First-minimum argmin over the codebook (sublane) axis, in
                # int32 (matches torch.argmin tie-breaking inside a chunk).
                min_c = jnp.min(dist, axis=0, keepdims=True)         # (1, tm)
                lidx = jnp.min(
                    jnp.where(dist <= min_c, iota, jnp.int32(kc)),
                    axis=0, keepdims=True)                            # (1, tm)

                # Dequantize this chunk's winners: e_c^T @ onehot -> (D, tm).
                onehot = (iota == lidx).astype(jnp.float32)           # (kc, tm)
                deq = jax.lax.dot_general(
                    e_c, onehot, (((0,), (0,)), ((), ())),
                    preferred_element_type=jnp.float32)               # (D, tm)

                if c == 0:
                    run_min, run_idx, q_acc = min_c, lidx, deq
                else:
                    # Strict '<' keeps the earliest chunk on exact ties,
                    # matching torch.argmin first-minimum semantics.
                    improves = min_c < run_min                        # (1, tm)
                    run_idx = jnp.where(improves, lidx + jnp.int32(c0), run_idx)
                    q_acc = jnp.where(improves, deq, q_acc)
                    run_min = jnp.minimum(run_min, min_c)

            q_ref[b] = q_acc.astype(q_ref.dtype)
            idx_ref[b] = run_idx                                      # lane-dense

    return kernel


def vq_channels_first(x_ncm, embedding_padded, half_e2_padded, *,
                      tm=None, k_chunk=None, dist_in_bf16=False):
    """x_ncm: (N, D, M) activations; embedding_padded: (Kp, D); half_e2: (Kp, 1)."""
    N, D, M = x_ncm.shape
    Kp = embedding_padded.shape[0]
    itemsize = jnp.dtype(x_ncm.dtype).itemsize

    # ---- pixel-tile / image-group selection --------------------------------
    # Target >= ~1 MiB of x per grid step so HBM traffic dominates the fixed
    # ~0.35 us per-step overhead.
    if tm is None:
        tm = _round_up(max(512, (1 << 20) // (itemsize * D)), 128)
    else:
        tm = _round_up(max(128, tm), 128)

    m_pad = _round_up(M, 128)
    if m_pad <= tm:
        # Whole image fits in one tile: group several images per block.
        nb = max(1, min(N, tm // m_pad, 8))
        if N >= 4:
            # Keep enough grid steps for v7x megacore balance.
            nb = max(1, min(nb, N // 4))
        else:
            nb = 1
        tm = m_pad
    else:
        nb = 1
        m_pad = _round_up(M, tm)

    if m_pad != M:
        x_ncm = jnp.pad(x_ncm, ((0, 0), (0, 0), (0, m_pad - M)))
    n_pad = _round_up(N, nb)
    if n_pad != N:
        x_ncm = jnp.pad(x_ncm, ((0, n_pad - N), (0, 0), (0, 0)))

    # ---- codebook chunking --------------------------------------------------
    # Keep the (kc, tm) f32 intermediates (dist / onehot / iota) bounded so
    # they fit comfortably inside v7x's 64 MiB VMEM even for large codebooks.
    if k_chunk is None:
        kc_cap = max(128, ((1 << 20) // max(tm, 1)) // 128 * 128)
        kc = min(Kp, 1024, kc_cap)
    else:
        kc = min(Kp, max(128, _round_up(k_chunk, 128)))
    while Kp % kc != 0:          # Kp is a multiple of 128, so this terminates
        kc -= 128

    grid = (n_pad // nb, m_pad // tm)

    flops = 4 * n_pad * m_pad * Kp * D          # two (Kp,D)x(D,tm)-class matmuls
    bytes_accessed = (itemsize * 2 * n_pad * m_pad * D
                      + 4 * (Kp * D + Kp) + 4 * n_pad * m_pad)

    q, idx = pl.pallas_call(
        _make_vq_kernel(kc, dist_in_bf16),
        out_shape=(
            jax.ShapeDtypeStruct((n_pad, D, m_pad), x_ncm.dtype),
            jax.ShapeDtypeStruct((n_pad, 1, m_pad), jnp.int32),
        ),
        grid_spec=pltpu.PrefetchScalarGridSpec(
            num_scalar_prefetch=0,
            grid=grid,
            in_specs=[
                pl.BlockSpec((nb, D, tm), lambda n, j: (n, 0, j)),
                # Grid-invariant codebook + half-norms: single-buffered to
                # halve their resident VMEM.
                pl.BlockSpec((Kp, D), lambda n, j: (0, 0),
                             pipeline_mode=pl.Buffered(1)),
                pl.BlockSpec((Kp, 1), lambda n, j: (0, 0),
                             pipeline_mode=pl.Buffered(1)),
            ],
            out_specs=[
                pl.BlockSpec((nb, D, tm), lambda n, j: (n, 0, j)),
                pl.BlockSpec((nb, 1, tm), lambda n, j: (n, 0, j)),
            ],
        ),
        compiler_params=pltpu.CompilerParams(
            dimension_semantics=("parallel", "parallel"),
            vmem_limit_bytes=_vmem_limit_bytes(),
        ),
        cost_estimate=pl.CostEstimate(
            flops=flops, transcendentals=0, bytes_accessed=bytes_accessed),
    )(x_ncm, embedding_padded, half_e2_padded)

    q = q[:N, :, :M]
    idx = idx[:N, :, :M]
    return q, idx


class VectorQuantizerPallas:
    """JAX/Pallas port of the PyTorch VectorQuantizer forward pass."""

    def __init__(self, num_embeddings: int, embedding_dim: int,
                 commitment_cost: float = 0.25, key=None):
        self.num_embeddings = num_embeddings
        self.embedding_dim = embedding_dim
        self.commitment_cost = commitment_cost  # unused in forward (as in spec)
        if key is None:
            key = jax.random.PRNGKey(0)
        # nn.Embedding.weight.data.uniform_(-1/K, 1/K)
        self.embedding = jax.random.uniform(
            key, (num_embeddings, embedding_dim), dtype=jnp.float32,
            minval=-1.0 / num_embeddings, maxval=1.0 / num_embeddings)

        # Pad the codebook to a lane-full multiple of 128 rows; hoist the
        # per-row HALF squared norms (factor of 2 folded in) out of the
        # kernel.  Padded rows get a huge norm so they can never win.
        kp = _round_up(num_embeddings, 128)
        self._emb_padded = jnp.pad(
            self.embedding, ((0, kp - num_embeddings), (0, 0)))
        half_e2 = 0.5 * jnp.sum(self.embedding.astype(jnp.float32) ** 2,
                                axis=1, keepdims=True)
        self._half_e2_padded = jnp.pad(
            half_e2, ((0, kp - num_embeddings), (0, 0)),
            constant_values=1e30)   # keep f32: sentinel must not overflow

    def __call__(self, inputs: jnp.ndarray, *, tm=None, k_chunk=None,
                 dist_in_bf16: bool = False):
        # inputs: NCHW, C == embedding_dim.  No transposes: a pure reshape puts
        # pixels on the minor (lane) axis, which is the kernel's layout.
        N, C, H, W = inputs.shape
        assert C == self.embedding_dim
        x = inputs.reshape(N, C, H * W)
        q, idx = vq_channels_first(
            x, self._emb_padded, self._half_e2_padded,
            tm=tm, k_chunk=k_chunk, dist_in_bf16=dist_in_bf16)
        quantized = q.reshape(N, C, H, W)
        indices = idx.reshape(N, H, W)   # int32 (PyTorch returns int64)
        return quantized, indices


def _reference(inputs, embedding):
    """Pure-JAX reference mirroring the PyTorch forward.

    The per-pixel |x|^2 term is a constant per row and cannot change the
    argmin; it is omitted (as in the kernel) so the comparison is not
    sensitive to fp rounding at |x|^2 magnitude.
    """
    N, C, H, W = inputs.shape
    x = jnp.transpose(inputs, (0, 2, 3, 1)).reshape(-1, C)
    d = jnp.sum(embedding ** 2, axis=1) - 2.0 * (x @ embedding.T)
    idx = jnp.argmin(d, axis=1)
    q = embedding[idx].reshape(N, H, W, C)
    return jnp.transpose(q, (0, 3, 1, 2)), idx.reshape(N, H, W)


if __name__ == "__main__":
    def run_case(name, num_embeddings, embedding_dim, N, H, W, seed, **kw):
        key = jax.random.PRNGKey(seed)
        k_emb, k_in = jax.random.split(key)
        vq = VectorQuantizerPallas(num_embeddings, embedding_dim, key=k_emb)
        x = jax.random.normal(k_in, (N, embedding_dim, H, W), dtype=jnp.float32)
        q, idx = vq(x, **kw)
        q = jax.block_until_ready(q)
        idx = jax.block_until_ready(idx)
        q_ref, idx_ref = _reference(x, vq.embedding)
        assert q.shape == (N, embedding_dim, H, W), name
        assert idx.shape == (N, H, W), name
        assert jnp.array_equal(idx, idx_ref), f"{name}: indices mismatch"
        assert jnp.allclose(q, q_ref, atol=1e-5), f"{name}: quantized mismatch"

    # 1) Baseline shapes (single K-chunk, one image per block).
    run_case("base", num_embeddings=64, embedding_dim=32, N=2, H=16, W=16, seed=0)
    # 2) Multi-chunk codebook path (K=200 padded to 256, chunked by 128),
    #    plus spatial padding / slice-back.
    run_case("kchunk", num_embeddings=200, embedding_dim=32, N=4, H=8, W=8,
             seed=1, k_chunk=128)
    # 3) Several small images grouped into one block (nb > 1 inner loop).
    run_case("nbatch", num_embeddings=64, embedding_dim=32, N=8, H=4, W=4, seed=2)

    # TODO(synk): the PyTorch module's commitment loss / perplexity are not
    # part of this forward's return signature and are intentionally omitted.
    print("KERNEL_OK")
</pallas_src>

<mosaic_0001>
module attributes {stable_mosaic.version = 11 : i64} {
  func.func @kernel(%arg0: i32, %arg1: i32, %arg2: memref<1x32x256xf32, #tpu.memory_space<vmem>>, %arg3: memref<128x32xf32, #tpu.memory_space<vmem>>, %arg4: memref<128x1xf32, #tpu.memory_space<vmem>>, %arg5: memref<1x32x256xf32, #tpu.memory_space<vmem>>, %arg6: memref<1x1x256xi32, #tpu.memory_space<vmem>>) attributes {dimension_semantics = [#tpu.dimension_semantics<parallel>, #tpu.dimension_semantics<parallel>], iteration_bounds = array<i64: 2, 1>, scalar_prefetch = 0 : i64, scratch_operands = 0 : i64, tpu.core_type = #tpu.core_type<tc>, window_params = [{transform_indices = @transform_0, window_bounds = array<i64: 1, 32, 256>}, {pipeline_mode = #tpu.pipeline_mode<synchronous>, transform_indices = @transform_1, window_bounds = array<i64: 128, 32>}, {pipeline_mode = #tpu.pipeline_mode<synchronous>, transform_indices = @transform_2, window_bounds = array<i64: 128, 1>}, {transform_indices = @transform_3, window_bounds = array<i64: 1, 32, 256>}, {transform_indices = @transform_4, window_bounds = array<i64: 1, 1, 256>}]} {
    %0 = tpu.iota {dimensions = array<i32: 0>} : vector<128x256xi32>
    %c0 = arith.constant 0 : index
    %c0_0 = arith.constant 0 : index
    %c0_1 = arith.constant 0 : index
    %1 = vector.load %arg2[%c0, %c0_0, %c0_1] : memref<1x32x256xf32, #tpu.memory_space<vmem>>, vector<1x32x256xf32>
    %2 = vector.shape_cast %1 : vector<1x32x256xf32> to vector<32x256xf32>
    %c0_2 = arith.constant 0 : index
    %c0_3 = arith.constant 0 : index
    %3 = vector.load %arg3[%c0_2, %c0_3] : memref<128x32xf32, #tpu.memory_space<vmem>>, vector<128x32xf32>
    %c0_4 = arith.constant 0 : index
    %c0_5 = arith.constant 0 : index
    %4 = vector.load %arg4[%c0_4, %c0_5] : memref<128x1xf32, #tpu.memory_space<vmem>>, vector<128x1xf32>
    %cst = arith.constant dense<0.000000e+00> : vector<128x256xf32>
    %5 = tpu.matmul %3, %2, %cst {dimension_numbers = #tpu.dot_dimension_numbers<[1], [0], [0], [1], [0, 0, 1, 1], [], []>} : vector<128x32xf32>, vector<32x256xf32>, vector<128x256xf32> -> vector<128x256xf32>
    %6 = vector.broadcast %4 : vector<128x1xf32> to vector<128x256xf32>
    %7 = arith.subf %6, %5 : vector<128x256xf32>
    %cst_6 = arith.constant dense<0x7F800000> : vector<256xf32>
    %8 = vector.multi_reduction <minimumf>, %7, %cst_6 [0] : vector<128x256xf32> to vector<256xf32>
    %9 = vector.shape_cast %8 : vector<256xf32> to vector<1x256xf32>
    %10 = vector.broadcast %9 : vector<1x256xf32> to vector<128x256xf32>
    %11 = arith.cmpf ole, %7, %10 : vector<128x256xf32>
    %c128_i32 = arith.constant 128 : i32
    %12 = vector.broadcast %c128_i32 : i32 to vector<128x256xi32>
    %13 = arith.select %11, %0, %12 : vector<128x256xi1>, vector<128x256xi32>
    %cst_7 = arith.constant dense<2147483647> : vector<256xi32>
    %14 = vector.multi_reduction <minsi>, %13, %cst_7 [0] : vector<128x256xi32> to vector<256xi32>
    %15 = vector.shape_cast %14 : vector<256xi32> to vector<1x256xi32>
    %16 = vector.broadcast %15 : vector<1x256xi32> to vector<128x256xi32>
    %17 = arith.cmpi eq, %0, %16 : vector<128x256xi32>
    %18 = arith.extui %17 : vector<128x256xi1> to vector<128x256xi32>
    %19 = arith.sitofp %18 : vector<128x256xi32> to vector<128x256xf32>
    %cst_8 = arith.constant dense<0.000000e+00> : vector<32x256xf32>
    %20 = tpu.matmul %3, %19, %cst_8 {dimension_numbers = #tpu.dot_dimension_numbers<[0], [0], [1], [1], [0, 1, 1, 1], [], []>} : vector<128x32xf32>, vector<128x256xf32>, vector<32x256xf32> -> vector<32x256xf32>
    %c0_9 = arith.constant 0 : index
    %c0_10 = arith.constant 0 : index
    %c0_11 = arith.constant 0 : index
    %21 = vector.load %arg5[%c0_9, %c0_10, %c0_11] : memref<1x32x256xf32, #tpu.memory_space<vmem>>, vector<1x32x256xf32>
    %22 = vector.shape_cast %21 : vector<1x32x256xf32> to vector<32x256xf32>
    %23 = vector.shape_cast %20 : vector<32x256xf32> to vector<1x32x256xf32>
    tpu.vector_store %arg5[%c0_9, %c0_10, %c0_11], %23 {strides = array<i32>} : memref<1x32x256xf32, #tpu.memory_space<vmem>>, vector<1x32x256xf32>,
    %c0_12 = arith.constant 0 : index
    %c0_13 = arith.constant 0 : index
    %c0_14 = arith.constant 0 : index
    %24 = vector.load %arg6[%c0_12, %c0_13, %c0_14] : memref<1x1x256xi32, #tpu.memory_space<vmem>>, vector<1x1x256xi32>
    %25 = vector.shape_cast %24 : vector<1x1x256xi32> to vector<1x256xi32>
    %26 = vector.shape_cast %15 : vector<1x256xi32> to vector<1x1x256xi32>
    tpu.vector_store %arg6[%c0_12, %c0_13, %c0_14], %26 {strides = array<i32>} : memref<1x1x256xi32, #tpu.memory_space<vmem>>, vector<1x1x256xi32>,
    return
  }
  func.func @transform_0(%arg0: i32, %arg1: i32) -> (i32, i32, i32) {
    %c0_i32 = arith.constant 0 : i32
    %c0_i32_0 = arith.constant 0 : i32
    return %arg0, %c0_i32, %arg1 : i32, i32, i32
  }
  func.func @transform_1(%arg0: i32, %arg1: i32) -> (i32, i32) {
    %c0_i32 = arith.constant 0 : i32
    %c0_i32_0 = arith.constant 0 : i32
    %c0_i32_1 = arith.constant 0 : i32
    return %c0_i32, %c0_i32_0 : i32, i32
  }
  func.func @transform_2(%arg0: i32, %arg1: i32) -> (i32, i32) {
    %c0_i32 = arith.constant 0 : i32
    %c0_i32_0 = arith.constant 0 : i32
    %c0_i32_1 = arith.constant 0 : i32
    return %c0_i32, %c0_i32_0 : i32, i32
  }
  func.func @transform_3(%arg0: i32, %arg1: i32) -> (i32, i32, i32) {
    %c0_i32 = arith.constant 0 : i32
    %c0_i32_0 = arith.constant 0 : i32
    return %arg0, %c0_i32, %arg1 : i32, i32, i32
  }
  func.func @transform_4(%arg0: i32, %arg1: i32) -> (i32, i32, i32) {
    %c0_i32 = arith.constant 0 : i32
    %c0_i32_0 = arith.constant 0 : i32
    return %arg0, %c0_i32, %arg1 : i32, i32, i32
  }
}

</mosaic_0001>

<bundles_post_ra>
// kernel: tpu_custom_call.1
= control target key start
LH: loop header
LB: loop body
LE: loop exit
PB: predicated region body
PF: predicated region fallthrough
CT: control target
= control target key end

     0   :  { %10 = vsyncpa [#allocation3], 0  ;;  %s2260_s0 = inlined_call_operand.vmem [shape: f32[2,32,256], index: 0, kind: input, shape index: {}]   ;;  %s2261_s1 = inlined_call_operand.vmem [shape: f32[128,32], index: 1, kind: input, shape index: {}]   ;;  %s2262_s2 = inlined_call_operand.vmem [shape: f32[128,1], index: 2, kind: input, shape index: {}]   ;;  %s2263_s3 = inlined_call_operand.hbm [shape: f32[2,32,256], index: 3, kind: output, shape index: {0}]   ;;  %s2264_s4 = inlined_call_operand.hbm [shape: s32[2,1,256], index: 4, kind: output, shape index: {1}]  }
   0x1   :  { %12 = vsyncpa [#allocation3 + $0x1], 0 }
   0x2   :  { %13 = vsyncpa [#allocation5], 0 }
   0x3   :  { %15 = vsyncpa [#allocation5 + $0x1], 0  ;;  %s1553_s15 = smov 0   ;;  %s1555_s16 = smov 0  }
   0x4   :  { %s1557_s17 = smov 0   ;;  %s1559_s18 = smov 0  }
   0x5   :  { %s1561_s19 = smov 0   ;;  %s1563_s20 = smov 0  }
   0x6 LB: > { %s1200_s21 = sadd.s32 4294967295, %s1518_s20   ;;  %s1201_s22 = sadd.s32 4294967294, %s1518_s20   ;;  %s1518_s20 = sphi %s1563_s20, %s21_s20   ;;  %s1514_s19 = sphi %s1561_s19, %s2279_s19   ;;  %s1510_s18 = sphi %s1559_s18, %s2278_s18   ;;  %s1506_s17 = sphi %s1557_s17, %s2277_s17   ;;  %s1502_s16 = sphi %s1555_s16, %s2276_s16   ;;  %s1498_s15 = sphi %s1553_s15, %s2275_s15  }
   0x7   : > { %s33_s23 = sadd.s32 1, %s1514_s19  ;;  %s112_s24 = sadd.s32 1, %s1506_s17 }
   0x8   : > { %p35_p0 = scmp.ge.s32.totalorder %s33_s23, 2  ;;  %p122_p1 = scmp.ne.s32.totalorder %s1506_s17, %s1502_s16 }
   0x9   : > { %p123_p2 = scmp.eq.s32.totalorder %s1200_s21, 1  ;;  %p128_p3 = scmp.ne.s32.totalorder %s1502_s16, %s1498_s15 }
   0xa   : > { %s2281_s23 = smov (%p35_p0, %s33_s23), 0  ;;  %p129_p5 = scmp.eq.s32.totalorder %s1201_s22, 1 }
   0xb   : > { %p1593_p4 = por %p123_p2, %p122_p1  ;;  %s107_s26 = ssub.s32 %s1514_s19, %s2281_s23 }
   0xc   : > { %p1204_p6 = scmp.ge.s32.totalorder %s1518_s20, 1  ;;  %p110_p7 = scmp.eq.s32.totalorder %s107_s26, 0 }
   0xd   : > { %p1600_p8 = por %p129_p5, %p128_p3  ;;  %p194_p9 = scmp.lt.s32.totalorder %s1518_s20, 3 }
   0xe   : > { %s1606_s28 = scalar_select %p110_p7, %s1506_s17, %s112_s24  }
   0xf   : > { %p195_p10 = pnand %p1204_p6, %p194_p9 }
  0x10   : > { %p230_p11 = scmp.lt.s32.totalorder (!%p195_p10), %s1510_s18, 1  ;;  %v1520_v0 = vmov (!%p195_p10), 0.0   ;;  %v1521_v1 = vmov (!%p195_p10), 0   ;;  %v282_v2 = vld [vmem:[%s2262_s2] sm:$0xff] (!%p195_p10)  ;;  %v283_v3 = vld [vmem:[%s2262_s2 + $0x8] sm:$0xff] (!%p195_p10)  ;;  %v284_v15 = vld [vmem:[%s2262_s2 + $0x10] sm:$0xff] (!%p195_p10) }
  0x11   : > { %198 = sbr.rel (%p195_p10) target bundleno = 651 (0x28b), region = 32  ;;  %411 = vmatprep.mubr.f32.mxu0 (!%p195_p10), %v1520_v0  ;;  %996 = vmatprep.mubr.f32.mxu1 (!%p195_p10), %v1520_v0  ;;  %v285_v17 = vld [vmem:[%s2262_s2 + $0x18] sm:$0xff] (!%p195_p10)  ;;  %v286_v18 = vld [vmem:[%s2262_s2 + $0x20] sm:$0xff] (!%p195_p10)  ;;  %vm298_vm0 = vcmask (!%p195_p10), 261120   ;;  %v287_v20 = vld [vmem:[%s2262_s2 + $0x28] sm:$0xff] (!%p195_p10)  ;;  %s2099_s8 = sand.u32 (!%p195_p10), 1, %s1502_s16  }
  0x12   : > { %1406 = vset.pattern.permute.xlu0 (!%p195_p10), %v1521_v1  ;;  %1407 = vset.pattern.permute.xlu1 (!%p195_p10), %v1521_v1  ;;  %v266_v19 = vld [vmem:[%s2261_s1] sm:$0xff] (!%p195_p10)  ;;  %v288_v21 = vld [vmem:[%s2262_s2 + $0x30] sm:$0xff] (!%p195_p10)  ;;  %v267_v22 = vld [vmem:[%s2261_s1 + $0x8] sm:$0xff] (!%p195_p10)  ;;  %s1206_s9 = sshll.u32 (!%p195_p10), %s2099_s8, 1  ;;  %s1299_s11 = sshll.u32 (!%p195_p10), %s1510_s18, 5 }
  0x13   : > { %510 = vperm.xlu0 (!%p195_p10), %1406, %v282_v2   ;;  %520 = vperm.xlu1 (!%p195_p10), %1407, %v284_v15   ;;  %v289_v23 = vld [vmem:[%s2262_s2 + $0x38] sm:$0xff] (!%p195_p10)  ;;  %v290_v24 = vld [vmem:[%s2262_s2 + $0x40] sm:$0xff] (!%p195_p10)  ;;  %v268_v25 = vld [vmem:[%s2261_s1 + $0x10] sm:$0xff] (!%p195_p10)  ;;  %s2127_s10 = scalar_lea.vmem (!%p195_p10), [#allocation4], %s1206_s9  ;;  %s2184_s14 = scalar_lea.hbm (!%p195_p10), %s2264_s4, %s1299_s11 }
  0x14   : > { %v291_v26 = vld [vmem:[%s2262_s2 + $0x48] sm:$0xff] (!%p195_p10)  ;;  %v292_v27 = vld [vmem:[%s2262_s2 + $0x50] sm:$0xff] (!%p195_p10)  ;;  %v269_v28 = vld [vmem:[%s2261_s1 + $0x18] sm:$0xff] (!%p195_p10)  ;;  %s1089_s21 = sshll.u32 (!%p195_p10), %s2127_s10, 4  ;;  %s1055_s22 = scalar_lea.sflag (!%p195_p10), [#allocation5], %s2099_s8  ;;  %s1090_s21 = int_to_ptr.vmem [resolvable:$true] %s1089_s21 }
  0x15   : > { %v293_v29 = vld [vmem:[%s2262_s2 + $0x58] sm:$0xff] (!%p195_p10)  ;;  %v294_v30 = vld [vmem:[%s2262_s2 + $0x60] sm:$0xff] (!%p195_p10)  ;;  %v295_v32 = vld [vmem:[%s2262_s2 + $0x68] sm:$0xff] (!%p195_p10)  ;;  %s1408_s24 = scalar_lea.vmem (!%p195_p10), %s1090_s21, 32  ;;  %s1524_s26 = smov (!%p195_p10), [#allocation4]  }
  0x16   : > { %v270_v31 = vld [vmem:[%s2261_s1 + $0x20] sm:$0xff] (!%p195_p10)  ;;  %v296_v33 = vld [vmem:[%s2262_s2 + $0x70] sm:$0xff] (!%p195_p10)  ;;  %v271_v34 = vld [vmem:[%s2261_s1 + $0x28] sm:$0xff] (!%p195_p10)  ;;  %p1409_p12 = scmp.ne.s32.totalorder (!%p195_p10), %s1090_s21, %s1408_s24 }
  0x17   : > { %515 = vperm.xlu0 (!%p195_p10), %1406, %v283_v3   ;;  %525 = vperm.xlu1 (!%p195_p10), %1407, %v285_v17   ;;  %v297_v35 = vld [vmem:[%s2262_s2 + $0x78] sm:$0xff] (!%p195_p10)  ;;  %v272_v36 = vld [vmem:[%s2261_s1 + $0x30] sm:$0xff] (!%p195_p10)  ;;  %v274_v38 = vld [vmem:[%s2261_s1 + $0x40] sm:$0xff] (!%p195_p10) }
  0x18   : > { %s231_s29 = scalar_select %p230_p11, %s1510_s18, 1  ;;  %v273_v37 = vld [vmem:[%s2261_s1 + $0x38] sm:$0xff]  ;;  %v275_v39 = vld [vmem:[%s2261_s1 + $0x48] sm:$0xff]  ;;  %v276_v40 = vld [vmem:[%s2261_s1 + $0x50] sm:$0xff] }
  0x19   : > { %v277_v41 = vld [vmem:[%s2261_s1 + $0x58] sm:$0xff]  ;;  %v278_v42 = vld [vmem:[%s2261_s1 + $0x60] sm:$0xff]  ;;  %v279_v43 = vld [vmem:[%s2261_s1 + $0x68] sm:$0xff]  ;;  %p1410_p13 = pnand %p1409_p12, %p1593_p4 }
  0x1a   : > { %s1297_s30 = sshll.u32 %s231_s29, 6  ;;  %v280_v44 = vld [vmem:[%s2261_s1 + $0x70] sm:$0xff]  ;;  %v281_v45 = vld [vmem:[%s2261_s1 + $0x78] sm:$0xff]  ;;  %s1412_s29 = sshll.u32 %s1524_s26, 4  ;;  %s1413_s29 = int_to_ptr.vmem [resolvable:$false] %s1412_s29 }
  0x1b   : > { %s237_s7 = scalar_lea.vmem %s2260_s0, %s1297_s30  ;;  %530 = vperm.xlu0 %1406, %v286_v18   ;;  %535 = vperm.xlu1 %1407, %v287_v20   ;;  %p1411_p0 = pneg %p1410_p13 }
  0x1c   : > { %v259_v4 = vld [vmem:[%s237_s7 + $0x8] sm:$0xff]  ;;  %v261_v5 = vld [vmem:[%s237_s7 + $0x18] sm:$0xff]  ;;  %v258_v6 = vld [vmem:[%s237_s7] sm:$0xff]  ;;  %s1414_s30 = scalar_lea.vmem %s1413_s29, 64  ;;  %p1415_p1 = scmp.lt.s32.totalorder %s1090_s21, %s1413_s29 }
  0x1d   : > { %v1300_v7 = vpack.c.bf16 %v261_v5, %v259_v4  ;;  %v260_v8 = vld [vmem:[%s237_s7 + $0x10] sm:$0xff]  ;;  %v263_v9 = vld [vmem:[%s237_s7 + $0x28] sm:$0xff]  ;;  %v265_v10 = vld [vmem:[%s237_s7 + $0x38] sm:$0xff]  ;;  %p1416_p2 = scmp.lt.s32.totalorder %s1414_s30, %s1408_s24 }
  0x1e   : > { %v1302_v11 = vpack.c.bf16 %v260_v8, %v258_v6  ;;  %v1304_v12 = vpack.c.bf16 %v265_v10, %v263_v9  ;;  %v262_v13 = vld [vmem:[%s237_s7 + $0x20] sm:$0xff]  ;;  %v264_v14 = vld [vmem:[%s237_s7 + $0x30] sm:$0xff] }
  0x1f   : > { %1301 = vmatprep.subr.bf16.mxu0 %v1300_v7  ;;  %v1306_v16 = vpack.c.bf16 %v264_v14, %v262_v13  ;;  %540 = vperm.xlu0 %1406, %v288_v21   ;;  %p1417_p3 = por %p1416_p2, %p1415_p1 }
  0x20   : > { %1303 = vmatpush1.bf16.msra.mxu0 %v1302_v11  ;;  %545 = vperm.xlu1 %1407, %v289_v23  }
  0x21   : > { %1305 = vmatprep.subr.bf16.mxu0 %v1304_v12  ;;  %p1418_p5 = pnand %p1417_p3, %p1411_p0 }
  0x23   : > { %550 = vperm.xlu0 %1406, %v290_v24  }
  0x24   : > { %1307 = vmatpush1.bf16.msra.mxu0 %v1306_v16  ;;  %555 = vperm.xlu1 %1407, %v291_v26  }
  0x27   : > { %1209 = vmatmul.mubr.msk.f32.vlgmr.msra.gmra.mrb[0].mxu0 %vm298_vm0, %v266_v19  ;;  %560 = vperm.xlu0 %1406, %v292_v27  }
  0x28   : > { %417 = vmatprep.mubr.f32.mxu0 %v1520_v0  ;;  %565 = vperm.xlu1 %1407, %v293_v29  }
  0x2b   : > { %1210 = vmatmul.mubr.msk.f32.gmra.mrb[2].mxu0 %vm298_vm0, %v267_v22  ;;  %570 = vperm.xlu0 %1406, %v294_v30  }
  0x2c   : > { %423 = vmatprep.mubr.f32.mxu0 %v1520_v0  ;;  %575 = vperm.xlu1 %1407, %v295_v32  }
  0x2f   : > { %1211 = vmatmul.mubr.msk.f32.gmra.mrb[4].mxu0 %vm298_vm0, %v268_v25  ;;  %580 = vperm.xlu0 %1406, %v296_v33  }
  0x30   : > { %429 = vmatprep.mubr.f32.mxu0 %v1520_v0  ;;  %585 = vperm.xlu1 %1407, %v297_v35  }
  0x33   : > { %1212 = vmatmul.mubr.msk.f32.gmra.mrb[6].mxu0 %vm298_vm0, %v269_v28 }
  0x34   : > { %435 = vmatprep.mubr.f32.mxu0 %v1520_v0 }
  0x37   : > { %1213 = vmatmul.mubr.msk.f32.gmra.mrb[8].mxu0 %vm298_vm0, %v270_v31 }
  0x38   : > { %441 = vmatprep.mubr.f32.mxu0 %v1520_v0 }
  0x3b   : > { %1214 = vmatmul.mubr.msk.f32.gmra.mrb[10].mxu0 %vm298_vm0, %v271_v34 }
  0x3c   : > { %447 = vmatprep.mubr.f32.mxu0 %v1520_v0 }
  0x3f   : > { %1215 = vmatmul.mubr.msk.f32.gmra.mrb[12].mxu0 %vm298_vm0, %v272_v36 }
  0x40   : > { %453 = vmatprep.mubr.f32.mxu0 %v1520_v0 }
  0x43   : > { %1216 = vmatmul.mubr.msk.f32.gmra.mrb[14].mxu0 %vm298_vm0, %v273_v37 }
  0x44   : > { %459 = vmatprep.mubr.f32.mxu0 %v1520_v0 }
  0x47   : > { %1217 = vmatmul.mubr.msk.f32.gmra.mrb[16].mxu0 %vm298_vm0, %v274_v38 }
  0x48   : > { %465 = vmatprep.mubr.f32.mxu0 %v1520_v0 }
  0x4b   : > { %1218 = vmatmul.mubr.msk.f32.gmra.mrb[18].mxu0 %vm298_vm0, %v275_v39 }
  0x4c   : > { %471 = vmatprep.mubr.f32.mxu0 %v1520_v0 }
  0x4d   : > { %900 = vxpose.xlu0.b32.start [1/16] (narrow) %v266_v19, 32 }
  0x4f   : > { %1219 = vmatmul.mubr.msk.f32.gmra.mrb[20].mxu0 %vm298_vm0, %v276_v40 }
  0x50   : > { %477 = vmatprep.mubr.f32.mxu0 %v1520_v0 }
  0x51   : > { %901 = vxpose.xlu0.b32.cont [2/16] (narrow) %v267_v22, 32 }
  0x53   : > { %1220 = vmatmul.mubr.msk.f32.gmra.mrb[22].mxu0 %vm298_vm0, %v277_v41 }
  0x54   : > { %483 = vmatprep.mubr.f32.mxu0 %v1520_v0 }
  0x55   : > { %902 = vxpose.xlu0.b32.cont [3/16] (narrow) %v268_v25, 32 }
  0x57   : > { %1221 = vmatmul.mubr.msk.f32.gmra.mrb[24].mxu0 %vm298_vm0, %v278_v42 }
  0x58   : > { %489 = vmatprep.mubr.f32.mxu0 %v1520_v0 }
  0x59   : > { %903 = vxpose.xlu0.b32.cont [4/16] (narrow) %v269_v28, 32 }
  0x5b   : > { %1222 = vmatmul.mubr.msk.f32.gmra.mrb[26].mxu0 %vm298_vm0, %v279_v43 }
  0x5c   : > { %495 = vmatprep.mubr.f32.mxu0 %v1520_v0 }
  0x5d   : > { %904 = vxpose.xlu0.b32.cont [5/16] (narrow) %v270_v31, 32 }
  0x5f   : > { %1223 = vmatmul.mubr.msk.f32.gmra.mrb[28].mxu0 %vm298_vm0, %v280_v44 }
  0x60   : > { %501 = vmatprep.mubr.f32.mxu0 %v1520_v0 }
  0x61   : > { %905 = vxpose.xlu0.b32.cont [6/16] (narrow) %v271_v34, 32 }
  0x63   : > { %1224 = vmatmul.mubr.msk.f32.gmra.mrb[30].mxu0 %vm298_vm0, %v281_v45 }
  0x65   : > { %906 = vxpose.xlu0.b32.cont [7/16] (narrow) %v272_v36, 32 }
  0x69   : > { %907 = vxpose.xlu0.b32.cont [8/16] (narrow) %v273_v37, 32 }
  0x6d   : > { %908 = vxpose.xlu0.b32.cont [9/16] (narrow) %v274_v38, 32 }
  0x71   : > { %909 = vxpose.xlu0.b32.cont [10/16] (narrow) %v275_v39, 32 }
  0x75   : > { %910 = vxpose.xlu0.b32.cont [11/16] (narrow) %v276_v40, 32 }
  0x79   : > { %911 = vxpose.xlu0.b32.cont [12/16] (narrow) %v277_v41, 32 }
  0x7d   : > { %912 = vxpose.xlu0.b32.cont [13/16] (narrow) %v278_v42, 32 }
  0x81   : > { %913 = vxpose.xlu0.b32.cont [14/16] (narrow) %v279_v43, 32 }
  0x85   : > { %914 = vxpose.xlu0.b32.cont [15/16] (narrow) %v280_v44, 32 }
  0x89   : > { %915 = vxpose.xlu0.b32.end [16/16] (narrow) %v281_v45, 32 }
  0x92   : > { %v511_v48 = vpop.permute.xlu0 %510  ;;  %v521_v51 = vpop.permute.xlu1 %520 }
  0x96   : > { %v516_v57 = vpop.permute.xlu0 %515  ;;  %v526_v60 = vpop.permute.xlu1 %525 }
  0x9a   : > { %v531_v6 = vpop.permute.xlu0 %530  ;;  %v536_v13 = vpop.permute.xlu1 %535 }
  0x9e   : > { %v541_v20 = vpop.permute.xlu0 %540 }
  0x9f   : > { %v546_v27 = vpop.permute.xlu1 %545 }
  0xa2   : > { %v551_v34 = vpop.permute.xlu0 %550 }
  0xa3   : > { %v556_v41 = vpop.permute.xlu1 %555 }
  0xfa   : > { %v413_v46 = vpop.f32.mrb[0].mxu0 }
  0xfb   : > { %v415_v47 = vpop.f32.mrb[1].mxu0  ;;  %v1742_v53 = vsub.f32 %v511_v48, %v413_v46 }
  0xfc   : > { %v1746_v56 = vsub.f32 %v511_v48, %v415_v47  ;;  %v561_v48 = vpop.permute.xlu0 %560 }
  0xfe   : > { %v419_v49 = vpop.f32.mrb[2].mxu0 }
  0xff   : > { %v421_v50 = vpop.f32.mrb[3].mxu0  ;;  %v1754_v63 = vsub.f32 %v516_v57, %v419_v49 }
 0x100   : > { %v1758_v3 = vsub.f32 %v516_v57, %v421_v50 }
 0x102   : > { %v425_v52 = vpop.f32.mrb[4].mxu0 }
 0x103   : > { %v1744_v54 = vsub.f32 %v521_v51, %v425_v52  ;;  %v427_v55 = vpop.f32.mrb[5].mxu0 }
 0x104   : > { %v1748_v58 = vsub.f32 %v521_v51, %v427_v55 }
 0x105   : > { %v620_v59 = vmin.f32 %v1742_v53, %v1744_v54 }
 0x106   : > { %v641_v61 = vmin.f32 %v1746_v56, %v1748_v58  ;;  %v431_v62 = vpop.f32.mrb[6].mxu0 }
 0x107   : > { %v1756_v1 = vsub.f32 %v526_v60, %v431_v62  ;;  %v433_v2 = vpop.f32.mrb[7].mxu0 }
 0x108   : > { %v1760_v4 = vsub.f32 %v526_v60, %v433_v2 }
 0x109   : > { %v621_v5 = vmin.f32 %v1754_v63, %v1756_v1 }
 0x10a   : > { %v642_v7 = vmin.f32 %v1758_v3, %v1760_v4  ;;  %v437_v8 = vpop.f32.mrb[8].mxu0 }
 0x10b   : > { %v1766_v9 = vsub.f32 %v531_v6, %v437_v8  ;;  %v439_v10 = vpop.f32.mrb[9].mxu0 }
 0x10c   : > { %v1768_v11 = vsub.f32 %v531_v6, %v439_v10 }
 0x10d   : > { %v622_v12 = vmin.f32 %v620_v59, %v1766_v9  ;;  %v566_v59 = vpop.permute.xlu1 %565 }
 0x10e   : > { %v643_v14 = vmin.f32 %v641_v61, %v1768_v11  ;;  %v443_v15 = vpop.f32.mrb[10].mxu0 }
 0x10f   : > { %v1772_v16 = vsub.f32 %v536_v13, %v443_v15  ;;  %v445_v17 = vpop.f32.mrb[11].mxu0 }
 0x110   : > { %v1774_v18 = vsub.f32 %v536_v13, %v445_v17 }
 0x111   : > { %v623_v19 = vmin.f32 %v621_v5, %v1772_v16  ;;  %v576_v17 = vpop.permute.xlu1 %575 }
 0x112   : > { %v644_v21 = vmin.f32 %v642_v7, %v1774_v18  ;;  %v449_v22 = vpop.f32.mrb[12].mxu0  ;;  %v571_v7 = vpop.permute.xlu0 %570 }
 0x113   : > { %v1778_v23 = vsub.f32 %v541_v20, %v449_v22  ;;  %v451_v24 = vpop.f32.mrb[13].mxu0 }
 0x114   : > { %v1780_v25 = vsub.f32 %v541_v20, %v451_v24 }
 0x115   : > { %v624_v26 = vmin.f32 %v622_v12, %v1778_v23 }
 0x116   : > { %v645_v28 = vmin.f32 %v643_v14, %v1780_v25  ;;  %v455_v29 = vpop.f32.mrb[14].mxu0 }
 0x117   : > { %v1784_v30 = vsub.f32 %v546_v27, %v455_v29  ;;  %v457_v31 = vpop.f32.mrb[15].mxu0 }
 0x118   : > { %v1786_v32 = vsub.f32 %v546_v27, %v457_v31  ;;  %v581_v27 = vpop.permute.xlu0 %580 }
 0x119   : > { %v625_v33 = vmin.f32 %v623_v19, %v1784_v30 }
 0x11a   : > { %v646_v35 = vmin.f32 %v644_v21, %v1786_v32  ;;  %v461_v36 = vpop.f32.mrb[16].mxu0 }
 0x11b   : > { %v1790_v37 = vsub.f32 %v551_v34, %v461_v36  ;;  %v463_v38 = vpop.f32.mrb[17].mxu0  ;;  %v586_v36 = vpop.permute.xlu1 %585 }
 0x11c   : > { %v1792_v39 = vsub.f32 %v551_v34, %v463_v38 }
 0x11d   : > { %v626_v40 = vmin.f32 %v624_v26, %v1790_v37 }
 0x11e   : > { %v647_v42 = vmin.f32 %v645_v28, %v1792_v39  ;;  %v467_v43 = vpop.f32.mrb[18].mxu0 }
 0x11f   : > { %v1796_v44 = vsub.f32 %v556_v41, %v467_v43  ;;  %v469_v45 = vpop.f32.mrb[19].mxu0 }
 0x120   : > { %v1798_v46 = vsub.f32 %v556_v41, %v469_v45 }
 0x121   : > { %v627_v47 = vmin.f32 %v625_v33, %v1796_v44 }
 0x122   : > { %v648_v49 = vmin.f32 %v646_v35, %v1798_v46  ;;  %v473_v50 = vpop.f32.mrb[20].mxu0 }
 0x123   : > { %v1802_v51 = vsub.f32 %v561_v48, %v473_v50  ;;  %v475_v52 = vpop.f32.mrb[21].mxu0  ;;  %v241_v50 = vlaneseq }
 0x124   : > { %v1804_v55 = vsub.f32 %v561_v48, %v475_v52 }
 0x125   : > { %v628_v57 = vmin.f32 %v626_v40, %v1802_v51 }
 0x126   : > { %v649_v60 = vmin.f32 %v647_v42, %v1804_v55  ;;  %v479_v61 = vpop.f32.mrb[22].mxu0 }
 0x127   : > { %v1808_v62 = vsub.f32 %v566_v59, %v479_v61  ;;  %v481_v2 = vpop.f32.mrb[23].mxu0  ;;  %v1839_v61 = vshrl.u32 %v241_v50, 7 }
 0x128   : > { %v1810_v5 = vsub.f32 %v566_v59, %v481_v2 }
 0x129   : > { %v629_v6 = vmin.f32 %v627_v47, %v1808_v62 }
 0x12a   : > { %v650_v8 = vmin.f32 %v648_v49, %v1810_v5  ;;  %v485_v10 = vpop.f32.mrb[24].mxu0 }
 0x12b   : > { %v1814_v12 = vsub.f32 %v571_v7, %v485_v10  ;;  %v487_v13 = vpop.f32.mrb[25].mxu0  ;;  %v1842_v10 = vadd.s32 8, %v1839_v61 }
 0x12c   : > { %v1816_v14 = vsub.f32 %v571_v7, %v487_v13  ;;  %v1845_v13 = vadd.s32 16, %v1839_v61 }
 0x12d   : > { %v630_v15 = vmin.f32 %v628_v57, %v1814_v12 }
 0x12e   : > { %v651_v19 = vmin.f32 %v649_v60, %v1816_v14  ;;  %v491_v20 = vpop.f32.mrb[26].mxu0 }
 0x12f   : > { %v1820_v21 = vsub.f32 %v576_v17, %v491_v20  ;;  %v493_v22 = vpop.f32.mrb[27].mxu0  ;;  %v1854_v20 = vadd.s32 40, %v1839_v61 }
 0x130   : > { %v1822_v24 = vsub.f32 %v576_v17, %v493_v22  ;;  %v1848_v17 = vadd.s32 24, %v1839_v61  ;;  %v1857_v22 = vadd.s32 48, %v1839_v61 }
 0x131   : > { %v631_v26 = vmin.f32 %v629_v6, %v1820_v21 }
 0x132   : > { %v652_v28 = vmin.f32 %v650_v8, %v1822_v24  ;;  %v497_v29 = vpop.f32.mrb[28].mxu0 }
 0x133   : > { %v1826_v31 = vsub.f32 %v581_v27, %v497_v29  ;;  %v499_v33 = vpop.f32.mrb[29].mxu0 }
 0x134   : > { %v1828_v34 = vsub.f32 %v581_v27, %v499_v33  ;;  %v1863_v27 = vadd.s32 64, %v1839_v61  ;;  %v1871_v33 = vadd.s32 80, %v1839_v61 }
 0x135   : > { %v632_v35 = vmin.f32 %v630_v15, %v1826_v31 }
 0x136   : > { %v653_v38 = vmin.f32 %v651_v19, %v1828_v34  ;;  %v503_v40 = vpop.f32.mrb[30].mxu0  ;;  %v1851_v19 = vadd.s32 32, %v1839_v61 }
 0x137   : > { %v1832_v41 = vsub.f32 %v586_v36, %v503_v40  ;;  %v505_v42 = vpop.f32.mrb[31].mxu0  ;;  %v1912_v40 = vadd.s32 104, %v1839_v61 }
 0x138   : > { %v1834_v43 = vsub.f32 %v586_v36, %v505_v42  ;;  %v1877_v36 = vadd.s32 96, %v1839_v61  ;;  %v1915_v42 = vadd.s32 112, %v1839_v61 }
 0x139   : > { %v633_v45 = vmin.f32 %v631_v26, %v1832_v41  ;;  %v1860_v26 = vadd.s32 56, %v1839_v61 }
 0x13a   : > { %v654_v47 = vmin.f32 %v652_v28, %v1834_v43  ;;  %v1866_v28 = vadd.s32 72, %v1839_v61 }
 0x13b   : > { %v634_v48 = vmin.f32 %v632_v35, %v633_v45  ;;  %v1874_v35 = vadd.s32 88, %v1839_v61  ;;  %v1918_v45 = vadd.s32 120, %v1839_v61 }
 0x13c   : > { %v655_v49 = vmin.f32 %v653_v38, %v654_v47 }
 0x13d   : > { %v635_v52 = vrot.slane %v634_v48, 4 }
 0x13e   : > { %v656_v57 = vrot.slane %v655_v49, 4 }
 0x13f   : > { %v636_v59 = vmin.f32 %v634_v48, %v635_v52 }
 0x140   : > { %v657_v60 = vmin.f32 %v655_v49, %v656_v57 }
 0x141   : > { %v637_v2 = vrot.slane %v636_v59, 2 }
 0x142   : > { %v658_v6 = vrot.slane %v657_v60, 2 }
 0x143   : > { %v638_v7 = vmin.f32 %v636_v59, %v637_v2 }
 0x144   : > { %v659_v8 = vmin.f32 %v657_v60, %v658_v6 }
 0x145   : > { %v639_v15 = vrot.slane %v638_v7, 1 }
 0x146   : > { %v660_v38 = vrot.slane %v659_v8, 1 }
 0x147   : > { %v1868_v29 = vmin.f32 %v638_v7, %v639_v15 }
 0x148   : > { %v1920_v47 = vmin.f32 %v659_v8, %v660_v38 }
 0x149   : > { %vm662_vm1 = vcmp.le.f32.partialorder %v1742_v53, %v1868_v29  ;;  %vm664_vm2 = vcmp.le.f32.partialorder %v1754_v63, %v1868_v29  ;;  %vm666_vm3 = vcmp.le.f32.partialorder %v1744_v54, %v1868_v29  ;;  %vm668_vm4 = vcmp.le.f32.partialorder %v1756_v1, %v1868_v29 }
 0x14a   : > { %vm670_vm5 = vcmp.le.f32.partialorder %v1766_v9, %v1868_v29  ;;  %vm672_vm6 = vcmp.le.f32.partialorder %v1772_v16, %v1868_v29  ;;  %vm674_vm7 = vcmp.le.f32.partialorder %v1778_v23, %v1868_v29  ;;  %vm676_vm8 = vcmp.le.f32.partialorder %v1784_v30, %v1868_v29 }
 0x14b   : > { %vm678_vm9 = vcmp.le.f32.partialorder %v1790_v37, %v1868_v29  ;;  %vm680_vm10 = vcmp.le.f32.partialorder %v1796_v44, %v1868_v29  ;;  %vm682_vm11 = vcmp.le.f32.partialorder %v1802_v51, %v1868_v29  ;;  %vm684_vm12 = vcmp.le.f32.partialorder %v1808_v62, %v1868_v29 }
 0x14c   : > { %vm686_vm13 = vcmp.le.f32.partialorder %v1814_v12, %v1868_v29  ;;  %vm688_vm14 = vcmp.le.f32.partialorder %v1820_v21, %v1868_v29  ;;  %vm690_vm15 = vcmp.le.f32.partialorder %v1826_v31, %v1868_v29  ;;  %vm692_vm0 = vcmp.le.f32.partialorder %v1832_v41, %v1868_v29 }
 0x14d   : > { %v694_v48 = vsel %vm662_vm1, %v1839_v61, 128  ;;  %v696_v49 = vsel %vm664_vm2, %v1842_v10, 128  ;;  %v698_v52 = vsel %vm666_vm3, %v1845_v13, 128  ;;  %v700_v57 = vsel %vm668_vm4, %v1848_v17, 128 }
 0x14e   : > { %v702_v53 = vsel %vm670_vm5, %v1851_v19, 128  ;;  %v704_v63 = vsel %vm672_vm6, %v1854_v20, 128  ;;  %v706_v54 = vsel %vm674_vm7, %v1857_v22, 128  ;;  %v708_v1 = vsel %vm676_vm8, %v1860_v26, 128 }
 0x14f   : > { %v710_v9 = vsel %vm678_vm9, %v1863_v27, 128  ;;  %v712_v16 = vsel %vm680_vm10, %v1866_v28, 128  ;;  %v714_v23 = vsel %vm682_vm11, %v1871_v33, 128  ;;  %v716_v30 = vsel %vm684_vm12, %v1874_v35, 128 }
 0x150   : > { %vm726_vm1 = vcmp.lt.s32.totalorder %v694_v48, %v698_v52  ;;  %vm728_vm2 = vcmp.lt.s32.totalorder %v696_v49, %v700_v57  ;;  %vm663_vm3 = vcmp.le.f32.partialorder %v1746_v56, %v1920_v47  ;;  %vm665_vm4 = vcmp.le.f32.partialorder %v1758_v3, %v1920_v47 }
 0x151   : > { %v727_v37 = vsel %vm726_vm1, %v694_v48, %v698_v52  ;;  %v729_v44 = vsel %vm728_vm2, %v696_v49, %v700_v57  ;;  %vm679_vm6 = vcmp.le.f32.partialorder %v1792_v39, %v1920_v47  ;;  %vm687_vm12 = vcmp.le.f32.partialorder %v1816_v14, %v1920_v47 }
 0x152   : > { %vm730_vm7 = vcmp.lt.s32.totalorder %v727_v37, %v702_v53  ;;  %vm732_vm8 = vcmp.lt.s32.totalorder %v729_v44, %v704_v63  ;;  %vm689_vm9 = vcmp.le.f32.partialorder %v1822_v24, %v1920_v47  ;;  %v718_v7 = vsel %vm686_vm13, %v1877_v36, 128 }
 0x153   : > { %v731_v51 = vsel %vm730_vm7, %v727_v37, %v702_v53  ;;  %v733_v62 = vsel %vm732_vm8, %v729_v44, %v704_v63  ;;  %vm685_vm8 = vcmp.le.f32.partialorder %v1810_v5, %v1920_v47  ;;  %v720_v8 = vsel %vm688_vm14, %v1912_v40, 128 }
 0x154   : > { %vm734_vm1 = vcmp.lt.s32.totalorder %v731_v51, %v706_v54  ;;  %vm736_vm2 = vcmp.lt.s32.totalorder %v733_v62, %v708_v1  ;;  %v722_v48 = vsel %vm690_vm15, %v1915_v42, 128  ;;  %v724_v49 = vsel %vm692_vm0, %v1918_v45, 128 }
 0x155   : > { %v735_v59 = vsel %vm734_vm1, %v731_v51, %v706_v54  ;;  %v737_v60 = vsel %vm736_vm2, %v733_v62, %v708_v1  ;;  %vm691_vm1 = vcmp.le.f32.partialorder %v1828_v34, %v1920_v47  ;;  %vm693_vm2 = vcmp.le.f32.partialorder %v1834_v43, %v1920_v47 }
 0x156   : > { %vm738_vm11 = vcmp.lt.s32.totalorder %v735_v59, %v710_v9  ;;  %vm740_vm10 = vcmp.lt.s32.totalorder %v737_v60, %v712_v16  ;;  %v695_v21 = vsel %vm663_vm3, %v1839_v61, 128  ;;  %v697_v31 = vsel %vm665_vm4, %v1842_v10, 128 }
 0x157   : > { %v739_v2 = vsel %vm738_vm11, %v735_v59, %v710_v9  ;;  %v741_v6 = vsel %vm740_vm10, %v737_v60, %v712_v16  ;;  %vm2267_vm15 = vcmp.le.f32.partialorder %v1748_v58, %v1920_v47  ;;  %vm2268_vm0 = vcmp.le.f32.partialorder %v1760_v4, %v1920_v47 }
 0x158   : > { %vm742_vm7 = vcmp.lt.s32.totalorder %v739_v2, %v714_v23  ;;  %vm744_vm5 = vcmp.lt.s32.totalorder %v741_v6, %v716_v30  ;;  %v699_v41 = vsel %vm2267_vm15, %v1845_v13, 128  ;;  %v701_v29 = vsel %vm2268_vm0, %v1848_v17, 128 }
 0x159   : > { %v743_v15 = vsel %vm742_vm7, %v739_v2, %v714_v23  ;;  %v745_v38 = vsel %vm744_vm5, %v741_v6, %v716_v30  ;;  %vm2269_vm4 = vcmp.le.f32.partialorder %v1768_v11, %v1920_v47  ;;  %vm765_vm5 = vcmp.lt.s32.totalorder %v695_v21, %v699_v41 }
 0x15a   : > { %vm746_vm10 = vcmp.lt.s32.totalorder %v743_v15, %v718_v7  ;;  %vm748_vm11 = vcmp.lt.s32.totalorder %v745_v38, %v720_v8  ;;  %v703_v3 = vsel %vm2269_vm4, %v1851_v19, 128  ;;  %vm767_vm7 = vcmp.lt.s32.totalorder %v697_v31, %v701_v29 }
 0x15b   : > { %v747_v12 = vsel %vm746_vm10, %v743_v15, %v718_v7  ;;  %v749_v52 = vsel %vm748_vm11, %v745_v38, %v720_v8  ;;  %vm2270_vm10 = vcmp.le.f32.partialorder %v1774_v18, %v1920_v47  ;;  %v766_v54 = vsel %vm765_vm5, %v695_v21, %v699_v41 }
 0x15c   : > { %vm750_vm13 = vcmp.lt.s32.totalorder %v747_v12, %v722_v48  ;;  %vm752_vm14 = vcmp.lt.s32.totalorder %v749_v52, %v724_v49  ;;  %v705_v58 = vsel %vm2270_vm10, %v1854_v20, 128  ;;  %v768_v4 = vsel %vm767_vm7, %v697_v31, %v701_v29 }
 0x15d   : > { %v751_v57 = vsel %vm750_vm13, %v747_v12, %v722_v48  ;;  %v753_v56 = vsel %vm752_vm14, %v749_v52, %v724_v49  ;;  %vm2271_vm11 = vcmp.le.f32.partialorder %v1780_v25, %v1920_v47  ;;  %vm769_vm13 = vcmp.lt.s32.totalorder %v766_v54, %v703_v3 }
 0x15e   : > { %vm754_vm3 = vcmp.lt.s32.totalorder %v751_v57, %v753_v56  ;;  %v707_v1 = vsel %vm2271_vm11, %v1857_v22, 128  ;;  %vm771_vm14 = vcmp.lt.s32.totalorder %v768_v4, %v705_v58  ;;  %vm2272_vm0 = vcmp.le.f32.partialorder %v1786_v32, %v1920_v47 }
 0x15f   : > { %v755_v53 = vsel %vm754_vm3, %v751_v57, %v753_v56  ;;  %v709_v11 = vsel %vm2272_vm0, %v1860_v26, 128  ;;  %v770_v9 = vsel %vm769_vm13, %v766_v54, %v703_v3  ;;  %v772_v16 = vsel %vm771_vm14, %v768_v4, %v705_v58 }
 0x160   : > { %v756_v63 = vrot.slane %v755_v53, 4  ;;  %vm773_vm3 = vcmp.lt.s32.totalorder %v770_v9, %v707_v1  ;;  %vm775_vm4 = vcmp.lt.s32.totalorder %v772_v16, %v709_v11  ;;  %v711_v18 = vsel %vm679_vm6, %v1863_v27, 128 }
 0x161   : > { %vm2273_vm5 = vcmp.le.f32.partialorder %v1798_v46, %v1920_v47  ;;  %v774_v30 = vsel %vm773_vm3, %v770_v9, %v707_v1  ;;  %v776_v37 = vsel %vm775_vm4, %v772_v16, %v709_v11  ;;  %vm2274_vm7 = vcmp.le.f32.partialorder %v1804_v55, %v1920_v47 }
 0x162   : > { %vm757_vm15 = vcmp.lt.s32.totalorder %v755_v53, %v756_v63  ;;  %v713_v25 = vsel %vm2273_vm5, %v1866_v28, 128  ;;  %v715_v32 = vsel %vm2274_vm7, %v1871_v33, 128  ;;  %vm777_vm10 = vcmp.lt.s32.totalorder %v774_v30, %v711_v18 }
 0x163   : > { %v758_v23 = vsel %vm757_vm15, %v755_v53, %v756_v63  ;;  %vm779_vm11 = vcmp.lt.s32.totalorder %v776_v37, %v713_v25  ;;  %v717_v39 = vsel %vm685_vm8, %v1874_v35, 128  ;;  %v778_v51 = vsel %vm777_vm10, %v774_v30, %v711_v18 }
 0x164   : > { %v759_v44 = vrot.slane %v758_v23, 2  ;;  %v780_v62 = vsel %vm779_vm11, %v776_v37, %v713_v25  ;;  %vm781_vm6 = vcmp.lt.s32.totalorder %v778_v51, %v715_v32  ;;  %v719_v46 = vsel %vm687_vm12, %v1877_v36, 128 }
 0x165   : > { %vm783_vm13 = vcmp.lt.s32.totalorder %v780_v62, %v717_v39  ;;  %v721_v55 = vsel %vm689_vm9, %v1912_v40, 128  ;;  %v782_v59 = vsel %vm781_vm6, %v778_v51, %v715_v32  ;;  %v723_v5 = vsel %vm691_vm1, %v1915_v42, 128 }
 0x166   : > { %v784_v60 = vsel %vm783_vm13, %v780_v62, %v717_v39  ;;  %vm785_vm8 = vcmp.lt.s32.totalorder %v782_v59, %v719_v46  ;;  %vm760_vm15 = vcmp.lt.s32.totalorder %v758_v23, %v759_v44  ;;  %v725_v14 = vsel %vm693_vm2, %v1918_v45, 128 }
 0x167   : > { %vm787_vm14 = vcmp.lt.s32.totalorder %v784_v60, %v721_v55  ;;  %v786_v2 = vsel %vm785_vm8, %v782_v59, %v719_v46  ;;  %v761_v8 = vsel %vm760_vm15, %v758_v23, %v759_v44  ;;  %v1522_v12 = vmov 1966171168  }
 0x168   : > { %v788_v6 = vsel %vm787_vm14, %v784_v60, %v721_v55  ;;  %vm789_vm12 = vcmp.lt.s32.totalorder %v786_v2, %v723_v5  ;;  %v762_v34 = vrot.slane %v761_v8, 1  ;;  %v1031_v43 = vunpack.c.l.s4 %v1522_v12 }
 0x169   : > { %vm791_vm0 = vcmp.lt.s32.totalorder %v788_v6, %v725_v14  ;;  %v790_v24 = vsel %vm789_vm12, %v786_v2, %v723_v5  ;;  %v1523_v29 = vmov 1.0|1.0  }
 0x16a   : > { %v792_v7 = vsel %vm791_vm0, %v788_v6, %v725_v14  ;;  %vm763_vm3 = vcmp.lt.s32.totalorder %v761_v8, %v762_v34  ;;  %v1032_v31 = vunpack.c.0.s8 %v1031_v43 }
 0x16b   : > { %vm793_vm9 = vcmp.lt.s32.totalorder %v790_v24, %v792_v7  ;;  %v2082_v52 = vsel %vm763_vm3, %v761_v8, %v762_v34 }
 0x16c   : > { %v794_v15 = vsel %vm793_vm9, %v790_v24, %v792_v7  ;;  %vm804_vm5 = vcmp.eq.s32.totalorder %v1839_v61, %v2082_v52  ;;  %vm806_vm7 = vcmp.eq.s32.totalorder %v1842_v10, %v2082_v52  ;;  %v1035_v57 = vsub.s32 %v1032_v31, %v1839_v61 }
 0x16d   : > { %v795_v38 = vrot.slane %v794_v15, 4  ;;  %vm1310_vm14 = vmpackc.low %vm806_vm7, %vm804_vm5  ;;  %vm808_vm12 = vcmp.eq.s32.totalorder %v1845_v13, %v2082_v52  ;;  %vm810_vm0 = vcmp.eq.s32.totalorder %v1848_v17, %v2082_v52  ;;  %vm814_vm5 = vcmp.eq.s32.totalorder %v1854_v20, %v2082_v52 }
 0x16e   : > { %vm1314_vm3 = vmpackc.low %vm810_vm0, %vm808_vm12  ;;  %vm1046_vm7 = vcmp.lt.s32.totalorder %v241_v50, 256  ;;  %v916_v50 = vpop.trf.xlu0 }
 0x16f   : > { %vm796_vm1 = vcmp.lt.s32.totalorder %v794_v15, %v795_v38 }
 0x170   : > { %v797_v48 = vsel %vm796_vm1, %v794_v15, %v795_v38 }
 0x171   : > { %v798_v49 = vrot.slane %v797_v48, 2 }
 0x173   : > { %vm799_vm4 = vcmp.lt.s32.totalorder %v797_v48, %v798_v49 }
 0x174   : > { %v800_v47 = vsel %vm799_vm4, %v797_v48, %v798_v49 }
 0x175   : > { %v801_v21 = vrot.slane %v800_v47, 1 }
 0x177   : > { %vm802_vm2 = vcmp.lt.s32.totalorder %v800_v47, %v801_v21 }
 0x178   : > { %v2084_v41 = vsel %vm802_vm2, %v800_v47, %v801_v21  ;;  %vm812_vm2 = vcmp.eq.s32.totalorder %v1851_v19, %v2082_v52 }
 0x179   : > { %vm805_vm10 = vcmp.eq.s32.totalorder %v1839_v61, %v2084_v41  ;;  %vm807_vm11 = vcmp.eq.s32.totalorder %v1842_v10, %v2084_v41  ;;  %vm809_vm6 = vcmp.eq.s32.totalorder %v1845_v13, %v2084_v41  ;;  %vm811_vm13 = vcmp.eq.s32.totalorder %v1848_v17, %v2084_v41  ;;  %v917_v17 = vpop.trf.xlu0 }
 0x17a   : > { %vm1308_vm8 = vmpackc.low %vm807_vm11, %vm805_vm10  ;;  %vm813_vm9 = vcmp.eq.s32.totalorder %v1851_v19, %v2084_v41  ;;  %vm815_vm1 = vcmp.eq.s32.totalorder %v1854_v20, %v2084_v41  ;;  %v1029_v61 = vcombine.low %v2082_v52, %v2084_v41  ;;  %vm817_vm10 = vcmp.eq.s32.totalorder %v1857_v22, %v2084_v41 }
 0x17b   : > { %1309 = vmatprep.subr.msk.bf16.mxu1 %vm1308_vm8, %v1523_v29  ;;  %vm1312_vm15 = vmpackc.low %vm811_vm13, %vm809_vm6  ;;  %vm819_vm11 = vcmp.eq.s32.totalorder %v1860_v26, %v2084_v41  ;;  %vm816_vm8 = vcmp.eq.s32.totalorder %v1857_v22, %v2082_v52  ;;  %vm823_vm12 = vcmp.eq.s32.totalorder %v1866_v28, %v2084_v41 }
 0x17c   : > { %1311 = vmatpush1.bf16.msk.msra.mxu1 %vm1310_vm14, %v1523_v29  ;;  %v1036_v10 = vrot.slane %v1029_v61, %v1035_v57  ;;  %vm1316_vm4 = vmpackc.low %vm815_vm1, %vm813_vm9  ;;  %vm818_vm14 = vcmp.eq.s32.totalorder %v1860_v26, %v2082_v52  ;;  %vm820_vm1 = vcmp.eq.s32.totalorder %v1863_v27, %v2082_v52 }
 0x17d   : > { %1313 = vmatprep.subr.msk.bf16.mxu1 %vm1312_vm15, %v1523_v29  ;;  %vm1318_vm6 = vmpackc.low %vm814_vm5, %vm812_vm2  ;;  %vm821_vm15 = vcmp.eq.s32.totalorder %v1863_v27, %v2084_v41  ;;  %vm827_vm2 = vcmp.eq.s32.totalorder %v1874_v35, %v2084_v41  ;;  %v918_v19 = vpop.trf.xlu0 }
 0x17e   : > { %v1043_v13 = vrot.slane %v1036_v10, %v1035_v57  ;;  %vm1320_vm13 = vmpackc.low %vm819_vm11, %vm817_vm10  ;;  %vm824_vm10 = vcmp.eq.s32.totalorder %v1871_v33, %v2082_v52  ;;  %vm826_vm11 = vcmp.eq.s32.totalorder %v1874_v35, %v2082_v52 }
 0x17f   : > { %vm1322_vm0 = vmpackc.low %vm818_vm14, %vm816_vm8 }
 0x180   : > { %1315 = vmatpush1.bf16.msk.msra.mxu1 %vm1314_vm3, %v1523_v29  ;;  %1048 = vst.msk [vmem:[%s2127_s10] sm:$0x3] %vm1046_vm7, %v1043_v13  ;;  %vm1324_vm9 = vmpackc.low %vm823_vm12, %vm821_vm15  ;;  %vm822_vm3 = vcmp.eq.s32.totalorder %v1866_v28, %v2082_v52  ;;  %vm828_vm15 = vcmp.eq.s32.totalorder %v1877_v36, %v2082_v52  ;;  %vm830_vm12 = vcmp.eq.s32.totalorder %v1912_v40, %v2082_v52 }
 0x181   : > { %1317 = vmatprep.subr.msk.bf16.mxu1 %vm1316_vm4, %v1523_v29  ;;  %vm825_vm4 = vcmp.eq.s32.totalorder %v1871_v33, %v2084_v41  ;;  %vm1326_vm5 = vmpackc.low %vm822_vm3, %vm820_vm1  ;;  %v919_v20 = vpop.trf.xlu0 }
 0x182   : > { %vm1328_vm7 = vmpackc.low %vm827_vm2, %vm825_vm4  ;;  %vm832_vm4 = vcmp.eq.s32.totalorder %v1915_v42, %v2082_v52  ;;  %vm834_vm2 = vcmp.eq.s32.totalorder %v1918_v45, %v2082_v52 }
 0x183   : > { %vm1330_vm8 = vmpackc.low %vm826_vm11, %vm824_vm10 }
 0x184   : > { %1319 = vmatpush1.bf16.msk.msra.mxu1 %vm1318_vm6, %v1523_v29  ;;  %vm829_vm6 = vcmp.eq.s32.totalorder %v1877_v36, %v2084_v41  ;;  %vm1334_vm1 = vmpackc.low %vm830_vm12, %vm828_vm15 }
 0x185   : > { %1321 = vmatprep.subr.msk.bf16.mxu1 %vm1320_vm13, %v1523_v29  ;;  %vm831_vm13 = vcmp.eq.s32.totalorder %v1912_v40, %v2084_v41 }
 0x186   : > { %vm1332_vm14 = vmpackc.low %vm831_vm13, %vm829_vm6 }
 0x188   : > { %1323 = vmatpush1.bf16.msk.msra.mxu1 %vm1322_vm0, %v1523_v29  ;;  %vm833_vm0 = vcmp.eq.s32.totalorder %v1915_v42, %v2084_v41 }
 0x189   : > { %1325 = vmatprep.subr.msk.bf16.mxu1 %vm1324_vm9, %v1523_v29  ;;  %vm835_vm9 = vcmp.eq.s32.totalorder %v1918_v45, %v2084_v41 }
 0x18a   : > { %vm1336_vm3 = vmpackc.low %vm835_vm9, %vm833_vm0 }
 0x18c   : > { %1327 = vmatpush1.bf16.msk.msra.mxu1 %vm1326_vm5, %v1523_v29  ;;  %vm1338_vm5 = vmpackc.low %vm834_vm2, %vm832_vm4 }
 0x18d   : > { %1329 = vmatprep.subr.msk.bf16.mxu1 %vm1328_vm7, %v1523_v29 }
 0x190   : > { %1331 = vmatpush1.bf16.msk.msra.mxu1 %vm1330_vm8, %v1523_v29 }
 0x191   : > { %1333 = vmatprep.subr.msk.bf16.mxu1 %vm1332_vm14, %v1523_v29 }
 0x194   : > { %1335 = vmatpush1.bf16.msk.msra.mxu1 %vm1334_vm1, %v1523_v29 }
 0x195   : > { %1337 = vmatprep.subr.msk.bf16.mxu1 %vm1336_vm3, %v1523_v29 }
 0x198   : > { %1339 = vmatpush1.bf16.msk.msra.mxu1 %vm1338_vm5, %v1523_v29 }
 0x19b   : > { %997 = vmatmul.mubr.f32.vlgmr.msra.gmra.mrb[0].mxu1 %v916_v50 }
 0x19c   : > { %1002 = vmatprep.mubr.f32.mxu1 %v1520_v0 }
 0x19f   : > { %1003 = vmatmul.mubr.f32.gmra.mrb[2].mxu1 %v917_v17 }
 0x1a0   : > { %1008 = vmatprep.mubr.f32.mxu1 %v1520_v0 }
 0x1a3   : > { %1009 = vmatmul.mubr.f32.gmra.mrb[4].mxu1 %v918_v19 }
 0x1a4   : > { %1014 = vmatprep.mubr.f32.mxu1 %v1520_v0 }
 0x1a7   : > { %1015 = vmatmul.mubr.f32.gmra.mrb[6].mxu1 %v919_v20 }
 0x1a8   : > { %1421 = shalt.err (!%p1418_p5)
}
 0x1a9   : > { %s1422_s5 = scalar_lea.hbm %s2184_s14, 32  ;;  %s1426_s9 = scalar_lea.hbm %s2264_s4, 64 }
 0x1aa   : > { %p1423_p6 = scmp.ne.s32.totalorder %s2184_s14, %s1422_s5  ;;  %p1427_p10 = scmp.lt.u32.totalorder %s2184_s14, %s2264_s4 }
 0x1ab   : > { %p1428_p11 = scmp.lt.u32.totalorder %s1426_s9, %s1422_s5  ;;  %p1430_p13 = scmp.lt.u32.totalorder %s1422_s5, %s2184_s14 }
 0x1ac   : > { %p1424_p7 = pnand %p1423_p6, %p1593_p4 }
 0x1ad   : > { %p1429_p12 = por %p1428_p11, %p1427_p10 }
 0x1ae   : > { %p1425_p9 = pneg %p1424_p7 }
 0x1af   : > { %p1431_p0 = por %p1430_p13, %p1429_p12 }
 0x1b1   : > { %p1432_p1 = pnand %p1431_p0, %p1425_p9 }
 0x1b3   : > { %1435 = shalt.err (!%p1432_p1)
}
 0x1b4   : > { %1341 = dma.vmem_to_hbm [thread:$0]  (%p1593_p4), %s1090_s21, 32, %s2184_s14, %s1055_s22  }
 0x1b5   : > { %s1205_s12 = sshll.u32 %s2099_s8, 6  ;;  %s1298_s26 = sshll.u32 %s1510_s18, 10 }
 0x1b6   : > { %s221_s13 = scalar_lea.vmem [#allocation2], %s1205_s12  ;;  %s2212_s22 = scalar_lea.hbm %s2263_s3, %s1298_s26 }
 0x1b7   : > { %s1070_s24 = sshll.u32 %s221_s13, 4  ;;  %s1050_s29 = scalar_lea.sflag [#allocation3], %s2099_s8  ;;  %s2207_s24 = int_to_ptr.vmem [resolvable:$true] %s1070_s24 }
 0x1b8   : > { %s1436_s30 = scalar_lea.vmem %s2207_s24, 1024  ;;  %s1525_s18 = smov [#allocation2]  }
 0x1b9   : > { %p1437_p2 = scmp.ne.s32.totalorder %s2207_s24, %s1436_s30  ;;  %s1440_s5 = sshll.u32 %s1525_s18, 4  ;;  %s1441_s5 = int_to_ptr.vmem [resolvable:$false] %s1440_s5 }
 0x1ba   : > { %s1442_s6 = scalar_lea.vmem %s1441_s5, 2048  ;;  %p1443_p6 = scmp.lt.s32.totalorder %s2207_s24, %s1441_s5 }
 0x1bb   : > { %p1438_p3 = pnand %p1437_p2, %p1593_p4  ;;  %p1444_p7 = scmp.lt.s32.totalorder %s1442_s6, %s1436_s30 }
 0x1bd   : > { %p1439_p5 = pneg %p1438_p3  ;;  %p1445_p9 = por %p1444_p7, %p1443_p6 }
 0x1bf   : > { %p1446_p10 = pnand %p1445_p9, %p1439_p5 }
 0x26e   : > { %v998_v0 = vpop.f32.mrb[0].mxu1 }
 0x26f   : > { %1021 = vst [vmem:[%s221_s13] sm:$0xff] %v998_v0  ;;  %v1000_v22 = vpop.f32.mrb[1].mxu1 }
 0x270   : > { %1022 = vst [vmem:[%s221_s13 + $0x8] sm:$0xff] %v1000_v22 }
 0x272   : > { %v1004_v26 = vpop.f32.mrb[2].mxu1 }
 0x273   : > { %1023 = vst [vmem:[%s221_s13 + $0x10] sm:$0xff] %v1004_v26  ;;  %v1006_v27 = vpop.f32.mrb[3].mxu1 }
 0x274   : > { %1024 = vst [vmem:[%s221_s13 + $0x18] sm:$0xff] %v1006_v27 }
 0x276   : > { %v1010_v28 = vpop.f32.mrb[4].mxu1 }
 0x277   : > { %1025 = vst [vmem:[%s221_s13 + $0x20] sm:$0xff] %v1010_v28  ;;  %v1012_v33 = vpop.f32.mrb[5].mxu1 }
 0x278   : > { %1026 = vst [vmem:[%s221_s13 + $0x28] sm:$0xff] %v1012_v33 }
 0x27a   : > { %v1016_v35 = vpop.f32.mrb[6].mxu1 }
 0x27b   : > { %1027 = vst [vmem:[%s221_s13 + $0x30] sm:$0xff] %v1016_v35  ;;  %v1018_v36 = vpop.f32.mrb[7].mxu1 }
 0x27c   : > { %1028 = vst [vmem:[%s221_s13 + $0x38] sm:$0xff] %v1018_v36 }
 0x27d   : > { %1449 = shalt.err (!%p1446_p10)
}
 0x27e   : > { %s1450_s7 = scalar_lea.hbm %s2212_s22, 1024  ;;  %s1454_s11 = scalar_lea.hbm %s2263_s3, 2048 }
 0x27f   : > { %p1451_p11 = scmp.ne.s32.totalorder %s2212_s22, %s1450_s7  ;;  %p1455_p0 = scmp.lt.u32.totalorder %s2212_s22, %s2263_s3 }
 0x280   : > { %p1456_p1 = scmp.lt.u32.totalorder %s1454_s11, %s1450_s7  ;;  %p1458_p3 = scmp.lt.u32.totalorder %s1450_s7, %s2212_s22 }
 0x281   : > { %p1452_p12 = pnand %p1451_p11, %p1593_p4 }
 0x282   : > { %p1457_p2 = por %p1456_p1, %p1455_p0 }
 0x283   : > { %p1453_p13 = pneg %p1452_p12 }
 0x284   : > { %p1459_p5 = por %p1458_p3, %p1457_p2 }
 0x286   : > { %p1460_p6 = pnand %p1459_p5, %p1453_p13 }
 0x288   : > { %1463 = shalt.err (!%p1460_p6)
}
 0x289   : > { %s1526_s26 = smov 256   ;;  %s1527_s14 = smov 16  }
 0x28a   : > { %1340 = dma.vmem_to_hbm [thread:$0]  (%p1593_p4), %s2207_s24, 1024, %s2212_s22, %s1050_s29, %s1526_s26, %s1526_s26, %s1527_s14  }
 0x28b PF: > { %p1351_p7 = scmp.ge.s32.totalorder %s1518_s20, 2  ;;  %s1101_s21 = sand.u32 1, %s1498_s15  }
 0x28c   : > { %s1102_s30 = scalar_lea.sflag [#allocation3], %s1101_s21 }
 0x28d   : > { %p1345_p9 = pnand %p1351_p7, %p1600_p8 }
 0x28f   : > { %1489 = dma.done.wait (!%p1345_p9), %s1102_s30, 1024  }
 0x290   : > { %1491 = vsyncadd (!%p1345_p9), %s1102_s30, 4294966272  ;;  %s1111_s18 = scalar_lea.sflag [#allocation5], %s1101_s21 }
 0x291   : > { %1493 = dma.done.wait (!%p1345_p9), %s1111_s18, 32  }
 0x292   : > { %1495 = vsyncadd (!%p1345_p9), %s1111_s18, 4294967264  ;;  %s21_s20 = sadd.s32 1, %s1518_s20   ;;  %s2275_s15 = smov %s1502_s16 }
 0x293   : > { %p18_p10 = scmp.ge.s32.totalorder %s21_s20, 4   ;;  %s2276_s16 = smov %s1506_s17 }
 0x294   : > { %s2277_s17 = smov %s1606_s28  ;;  %s2278_s18 = smov %s1514_s19 }
 0x295   : > { %s2279_s19 = smov %s2281_s23  ;;  %20 = sbr.rel (!%p18_p10) target bundleno = 6 (0x6), region = 84 }
 0x29c   :  { %1116 = vsyncpa [#allocation3], 1 }
 0x29d   :  { %1118 = vsyncpa [#allocation3 + $0x1], 1 }
 0x29e   :  { %1119 = vsyncpa [#allocation5], 1 }
 0x29f   :  { %1121 = vsyncpa [#allocation5 + $0x1], 1 }

</bundles_post_ra>
